<compile_context>
chip_gen: v6e
topology: v6e:2x2x1
jax: 0.10.0
libtpu: 0.0.40
codegen_flags: <defaults>
</compile_context>

<pallas_src>
import functools

import jax
import jax.numpy as jnp
from jax.experimental import pallas as pl
from jax.experimental.pallas import tpu as pltpu


def _build_pe_table(max_len: int, d_model: int) -> jnp.ndarray:
    """Sinusoidal positional-encoding buffer, shape (max_len, 1, d_model)."""
    position = jnp.arange(max_len, dtype=jnp.float32)[:, None]            # (L, 1)
    div_term = jnp.exp(
        jnp.arange(0, d_model, 2, dtype=jnp.float32)
        * (-jnp.log(jnp.float32(10000.0)) / d_model)
    )                                                                      # (D/2,)
    pe = jnp.zeros((max_len, d_model), dtype=jnp.float32)
    pe = pe.at[:, 0::2].set(jnp.sin(position * div_term))
    pe = pe.at[:, 1::2].set(jnp.cos(position * div_term))
    return pe[:, None, :]                                                  # (L, 1, D)


def _broadcast_pe_lanes(pe_tile: jnp.ndarray, batch: int) -> jnp.ndarray:
    """(ts, D) -> (ts, B*D): replicate the d_model lanes once per batch element."""
    if batch == 1:
        return pe_tile
    return jnp.concatenate([pe_tile] * batch, axis=-1)


def _pe_add_kernel(x_ref, pe_ref, o_ref, *, batch: int):
    # x_ref/o_ref: (seq_tile, B*D); pe_ref: (seq_tile, D).
    pe = _broadcast_pe_lanes(pe_ref[...], batch)
    y = x_ref[...].astype(jnp.float32) + pe
    o_ref[...] = y.astype(o_ref.dtype)


def _pe_add_dropout_kernel(x_ref, pe_ref, bits_ref, o_ref, *,
                           batch: int, threshold: int, scale: float):
    # Inverted dropout via integer threshold: keep iff bits < (1-p) * 2^32.
    pe = _broadcast_pe_lanes(pe_ref[...], batch)
    y = x_ref[...].astype(jnp.float32) + pe
    keep = bits_ref[...] < jnp.uint32(threshold)
    y = jnp.where(keep, y * jnp.float32(scale), jnp.float32(0.0))
    o_ref[...] = y.astype(o_ref.dtype)


def positional_encoding(
    x: jnp.ndarray,
    pe_table: jnp.ndarray,
    *,
    p: float = 0.2,
    training: bool = False,
    rng_key: jax.Array | None = None,
    target_block_bytes: int = 2 * 1024 * 1024,
) -> jnp.ndarray:
    """x: (S, B, D). pe_table: (max_len, 1, D) or (max_len, D). Returns (S, B, D)."""
    S, B, D = x.shape
    pe = pe_table[:S].reshape(S, D).astype(jnp.float32)                    # (S, D)
    x_flat = x.reshape(S, B * D)                                           # lane-dense

    # Tile the sequence axis so each x block is ~target_block_bytes (multiple
    # of 8 sublane rows).  With double buffering of x / pe / bits / out this
    # stays well under the 32 MiB VMEM budget on every TPU generation.
    row_bytes = B * D * x_flat.dtype.itemsize
    rows = max(1, target_block_bytes // row_bytes)
    seq_tile = int(min(S, max(8, (rows // 8) * 8)))
    grid = (pl.cdiv(S, seq_tile),)  # Pallas masks the OOB tail block.

    x_spec = pl.BlockSpec((seq_tile, B * D), lambda i: (i, 0))
    pe_spec = pl.BlockSpec((seq_tile, D), lambda i: (i, 0))
    out_spec = pl.BlockSpec((seq_tile, B * D), lambda i: (i, 0))

    compiler_params = pltpu.CompilerParams(
        dimension_semantics=("parallel",),          # tiles independent; v7x 2-TC
        vmem_limit_bytes=32 * 1024 * 1024,
    )
    out_shape = jax.ShapeDtypeStruct((S, B * D), x.dtype)

    if training and p > 0.0:
        if rng_key is None:
            rng_key = jax.random.PRNGKey(0)
        bits = jax.random.bits(rng_key, (S, B * D), dtype=jnp.uint32)
        threshold = min(int(round((1.0 - p) * 4294967296.0)), 4294967295)
        kernel = functools.partial(
            _pe_add_dropout_kernel, batch=B, threshold=threshold,
            scale=1.0 / (1.0 - p))
        out_flat = pl.pallas_call(
            kernel,
            out_shape=out_shape,
            grid=grid,
            in_specs=[x_spec, pe_spec,
                      pl.BlockSpec((seq_tile, B * D), lambda i: (i, 0))],
            out_specs=out_spec,
            input_output_aliases={0: 0},            # x is fully overwritten
            compiler_params=compiler_params,
        )(x_flat, pe, bits)
    else:
        kernel = functools.partial(_pe_add_kernel, batch=B)
        out_flat = pl.pallas_call(
            kernel,
            out_shape=out_shape,
            grid=grid,
            in_specs=[x_spec, pe_spec],
            out_specs=out_spec,
            input_output_aliases={0: 0},
            compiler_params=compiler_params,
        )(x_flat, pe)

    return out_flat.reshape(S, B, D)


if __name__ == "__main__":
    # Small shapes implied by the forward: (seq_len, batch, d_model)
    S, B, D = 8, 2, 32
    MAX_LEN = 64  # stands in for max_len=5000 at small scale

    key = jax.random.PRNGKey(0)
    x = jax.random.normal(key, (S, B, D), dtype=jnp.float32)
    pe_table = _build_pe_table(MAX_LEN, D)

    # Reference (computed up front; the add is exact f32 so tolerance is tight).
    ref = x + pe_table[:S]

    # Inference-mode forward (dropout is identity), matching module.eval().
    out = jax.block_until_ready(positional_encoding(x, pe_table, p=0.2, training=False))
    assert out.shape == (S, B, D)
    assert jnp.allclose(out, ref, atol=1e-6, rtol=1e-6), "eval-path mismatch vs reference"

    # Training-mode forward: every element must be 0 (dropped) or (x+pe)/(1-p).
    drop_key = jax.random.PRNGKey(123)
    out_tr = jax.block_until_ready(
        positional_encoding(x, pe_table, p=0.2, training=True, rng_key=drop_key))
    assert out_tr.shape == (S, B, D)
    scaled = ref * (1.0 / (1.0 - 0.2))
    ok = jnp.isclose(out_tr, scaled, atol=1e-5) | (out_tr == 0.0)
    assert bool(jnp.all(ok)), "training-path values not in {0, (x+pe)/(1-p)}"

    print("KERNEL_OK")
</pallas_src>

<mosaic_0001>
module attributes {stable_mosaic.version = 11 : i64} {
  func.func @_pe_add_kernel(%arg0: i32, %arg1: memref<8x64xf32, #tpu.memory_space<vmem>>, %arg2: memref<8x32xf32, #tpu.memory_space<vmem>>, %arg3: memref<8x64xf32, #tpu.memory_space<vmem>>) attributes {dimension_semantics = [#tpu.dimension_semantics<parallel>], iteration_bounds = array<i64: 1>, scalar_prefetch = 0 : i64, scratch_operands = 0 : i64, tpu.core_type = #tpu.core_type<tc>, window_params = [{transform_indices = @transform_0, window_bounds = array<i64: 8, 64>}, {transform_indices = @transform_1, window_bounds = array<i64: 8, 32>}, {transform_indices = @transform_2, window_bounds = array<i64: 8, 64>}]} {
    %c0 = arith.constant 0 : index
    %c0_0 = arith.constant 0 : index
    %0 = vector.load %arg2[%c0, %c0_0] : memref<8x32xf32, #tpu.memory_space<vmem>>, vector<8x32xf32>
    %1 = tpu.concatenate %0, %0 in 1 : vector<8x32xf32>, vector<8x32xf32> -> vector<8x64xf32>
    %c0_1 = arith.constant 0 : index
    %c0_2 = arith.constant 0 : index
    %2 = vector.load %arg1[%c0_1, %c0_2] : memref<8x64xf32, #tpu.memory_space<vmem>>, vector<8x64xf32>
    %3 = arith.addf %2, %1 : vector<8x64xf32>
    %c0_3 = arith.constant 0 : index
    %c0_4 = arith.constant 0 : index
    %4 = vector.load %arg3[%c0_3, %c0_4] : memref<8x64xf32, #tpu.memory_space<vmem>>, vector<8x64xf32>
    tpu.vector_store %arg3[%c0_3, %c0_4], %3 {strides = array<i32>} : memref<8x64xf32, #tpu.memory_space<vmem>>, vector<8x64xf32>,
    return
  }
  func.func @transform_0(%arg0: i32) -> (i32, i32) {
    %c0_i32 = arith.constant 0 : i32
    %c0_i32_0 = arith.constant 0 : i32
    return %arg0, %c0_i32 : i32, i32
  }
  func.func @transform_1(%arg0: i32) -> (i32, i32) {
    %c0_i32 = arith.constant 0 : i32
    %c0_i32_0 = arith.constant 0 : i32
    return %arg0, %c0_i32 : i32, i32
  }
  func.func @transform_2(%arg0: i32) -> (i32, i32) {
    %c0_i32 = arith.constant 0 : i32
    %c0_i32_0 = arith.constant 0 : i32
    return %arg0, %c0_i32 : i32, i32
  }
}

</mosaic_0001>

<bundles_post_ra>
// kernel: tpu_custom_call.1
= control target key start
LH: loop header
LB: loop body
LE: loop exit
PB: predicated region body
PF: predicated region fallthrough
CT: control target
= control target key end

     0   :  { %7 = vsyncpa [#allocation3], 0  ;;  %s124_s0 = inlined_call_operand.hbm [shape: f32[8,64], index: 0, kind: input, shape index: {}, may-alias: {0,2}]   ;;  %s125_s1 = inlined_call_operand.vmem [shape: f32[8,32], index: 1, kind: input, shape index: {}]   ;;  %s126_s2 = inlined_call_operand.hbm [shape: f32[8,64], index: 2, kind: output, shape index: {}, may-alias: {0,2}]  }
   0x1   :  { %8 = vsyncpa [#allocation4], 0  ;;  %s97_s9 = smov [#allocation2]  }
   0x2   :  { %s15_s10 = sshll.u32 %s97_s9, 4  ;;  %s16_s10 = int_to_ptr.vmem [resolvable:$true] %s15_s10 }
   0x3   :  { %s61_s11 = scalar_lea.vmem %s16_s10, 128  ;;  %p66_p1 = scmp.lt.s32.totalorder %s16_s10, %s16_s10 }
   0x4   :  { %p62_p0 = scmp.ne.s32.totalorder %s16_s10, %s61_s11  ;;  %p67_p2 = scmp.lt.s32.totalorder %s61_s11, %s61_s11 }
   0x6   :  { %p68_p3 = por %p67_p2, %p66_p1 }
   0x8   :  { %p69_p4 = pnand %p68_p3, %p62_p0 }
   0xa   :  { %72 = shalt.err (!%p69_p4)
}
   0xb   :  { %18 = dma.hbm_to_vmem [thread:$0]  %s124_s0, 128, %s16_s10, [#allocation3]  }
   0xc   :  { %93 = dma.done.wait [#allocation3], 128  }
   0xd   :  { %94 = vsyncadd [#allocation3], 4294967168  ;;  %v24_v0 = vld [vmem:[%s125_s1] sm:$0xff]  ;;  %s98_s16 = smov 32   ;;  %vm29_vm0 = vcmask 261120   ;;  %s99_s17 = smov [#allocation5]  }
   0xe   :  { %26 = vrot.lane.b32.xlu0 %v24_v0, %s98_s16  ;;  %v31_v1 = vld [vmem:[#allocation2] sm:$0xff]  ;;  %s41_s18 = sshll.u32 %s99_s17, 4  ;;  %vm33_vm1 = vcmask 523264   ;;  %s42_s18 = int_to_ptr.vmem [resolvable:$true] %s41_s18 }
   0xf   :  { %s73_s19 = scalar_lea.vmem %s42_s18, 128  ;;  %p78_p6 = scmp.lt.s32.totalorder %s42_s18, %s42_s18 }
  0x10   :  { %p74_p5 = scmp.ne.s32.totalorder %s42_s18, %s73_s19  ;;  %p79_p7 = scmp.lt.s32.totalorder %s73_s19, %s73_s19 }
  0x12   :  { %p80_p8 = por %p79_p7, %p78_p6 }
  0x14   :  { %p81_p9 = pnand %p80_p8, %p74_p5 }
  0x80   :  { %v27_v2 = vpop.permute.xlu0 %26 }
  0x81   :  { %v30_v3 = vsel %vm29_vm0, %v24_v0, %v27_v2 }
  0x82   :  { %v32_v4 = vadd.f32 %v31_v1, %v30_v3 }
  0x84   :  { %34 = vst.msk [vmem:[#allocation5] sm:$0xff] %vm33_vm1, %v32_v4 }
  0x85   :  { %84 = shalt.err (!%p81_p9)
}
  0x86   :  { %44 = dma.vmem_to_hbm [thread:$0]  %s42_s18, 128, %s126_s2, [#allocation4]  }
  0x87   :  { %95 = dma.done.wait [#allocation4], 128  }
  0x88   :  { %96 = vsyncadd [#allocation4], 4294967168 }
  0x89   :  { %48 = vsyncpa [#allocation3], 1 }
  0x8a   :  { %49 = vsyncpa [#allocation4], 1 }

</bundles_post_ra>
